<compile_context>
chip_gen: v6e
topology: v6e:2x2x1
jax: 0.10.0
libtpu: 0.0.40
codegen_flags: <defaults>
</compile_context>

<pallas_src>
import jax
import jax.numpy as jnp
from jax.experimental import pallas as pl
from jax.experimental.pallas import tpu as pltpu


def _mpp_fused_kernel(w_ref, prm0_ref, dat0_ref, prm1_ref, dat1_ref, out_ref):
    """Both scales + weighted sum in a single grid-less invocation.

    w_ref:    (2,)        f32  SMEM  per-scale loss weights (w_triplet)
    prm*_ref: (2, C)      f32  VMEM  row 0 = anchor, row 1 = 1/var (lane-dense)
    dat*_ref: (2*B*k, C)  any  VMEM  rows [0:N) = pos, rows [N:2N) = neg
    out_ref:  (1, 1)      f32  VMEM  scalar total loss
    """
    margin = 1.0

    def scale_loss(prm_ref, dat_ref):
        n2 = dat_ref.shape[0]          # static: 2 * B * k
        n = n2 // 2
        mu = prm_ref[0:1, :]           # (1, C) lane-dense row
        inv_var = prm_ref[1:2, :]      # (1, C)
        x = dat_ref[...].astype(jnp.float32)            # (2N, C) in-vreg cast
        d = x - mu                                       # sublane broadcast
        # mahalanobis^2, reduce over channels on the lane axis (XLU)
        d2 = jnp.sum(d * d * inv_var, axis=-1, keepdims=True)   # (2N, 1)
        dist = jnp.sqrt(d2)                                      # one sqrt push
        # split the fused pos/neg slab and apply the triplet hinge
        hinge = jnp.maximum(dist[:n, :] - dist[n:, :] + margin, 0.0)  # (N, 1)
        # reduction='mean' over the B*k triplets
        return jnp.sum(hinge, axis=0, keepdims=True) * (1.0 / n)      # (1, 1)

    l0 = scale_loss(prm0_ref, dat0_ref)
    l1 = scale_loss(prm1_ref, dat1_ref)
    out_ref[...] = w_ref[0] * l0 + w_ref[1] * l1         # (1, 1) store


@jax.jit
def _mpp_loss_impl(w, a0, v0, p0, n0, a1, v1, p1, n1):
    def prep(anchor, var, pos, neg):
        C = anchor.shape[0]
        a_row = anchor.astype(jnp.float32).reshape(1, C)
        iv_row = (1.0 / var.astype(jnp.float32)).reshape(1, C)
        prm = jnp.concatenate([a_row, iv_row], axis=0)            # (2, C)

        def flat(x):                                              # (B,C,k)->(B*k,C)
            B, Cc, k = x.shape
            return jnp.transpose(x, (0, 2, 1)).reshape(B * k, Cc)

        dat = jnp.concatenate([flat(pos), flat(neg)], axis=0)     # (2*B*k, C)
        return prm, dat

    prm0, dat0 = prep(a0, v0, p0, n0)
    prm1, dat1 = prep(a1, v1, p1, n1)

    vmem = pltpu.MemorySpace.VMEM
    smem = pltpu.MemorySpace.SMEM

    out = pl.pallas_call(
        _mpp_fused_kernel,
        out_shape=jax.ShapeDtypeStruct((1, 1), jnp.float32),
        in_specs=[
            pl.BlockSpec(memory_space=smem),   # w     (2,)
            pl.BlockSpec(memory_space=vmem),   # prm0  (2, C0)
            pl.BlockSpec(memory_space=vmem),   # dat0  (2*B0*k0, C0)
            pl.BlockSpec(memory_space=vmem),   # prm1  (2, C1)
            pl.BlockSpec(memory_space=vmem),   # dat1  (2*B1*k1, C1)
        ],
        out_specs=pl.BlockSpec(memory_space=vmem),
    )(w, prm0, dat0, prm1, dat1)
    return out[0, 0]


def mpp_loss(anchors, variances, select_normals, select_abnormals,
             w_triplet=(5.0, 20.0)):
    """JAX/Pallas equivalent of MPPLoss.forward. Returns a scalar f32.

    Exactly two scales contribute (the module zips against its fixed
    2-element w_triplet, so any extra scales are dropped there as well).
    """
    n_scales = 2
    assert len(anchors) >= n_scales and len(variances) >= n_scales
    assert len(select_normals) >= n_scales and len(select_abnormals) >= n_scales
    w = jnp.asarray(w_triplet, dtype=jnp.float32).reshape(n_scales)
    return _mpp_loss_impl(
        w,
        anchors[0], variances[0], select_normals[0], select_abnormals[0],
        anchors[1], variances[1], select_normals[1], select_abnormals[1])


def _reference_jnp(anchors, variances, select_normals, select_abnormals,
                   w_triplet=(5.0, 20.0)):
    """Pure-jnp reference mirroring the PyTorch module (sanity check)."""
    total = 0.0
    for anchor, var, pos, neg, wt in zip(
            anchors, variances, select_normals, select_abnormals, w_triplet):
        B, C, k = pos.shape
        p = jnp.transpose(pos, (0, 2, 1)).reshape(B * k, C)
        n = jnp.transpose(neg, (0, 2, 1)).reshape(B * k, C)
        a = anchor[None, :]
        d_p = jnp.sqrt(jnp.sum((p - a) ** 2 / var, axis=-1))
        d_n = jnp.sqrt(jnp.sum((n - a) ** 2 / var, axis=-1))
        total = total + jnp.mean(jnp.maximum(d_p - d_n + 1.0, 0.0)) * wt
    return total


if __name__ == "__main__":
    key = jax.random.PRNGKey(0)

    # Two scales (matching w_triplet = [5, 20]), small deterministic shapes:
    #   scale 0: B=2, C=32, k=4   -> 8 triplets
    #   scale 1: B=2, C=64, k=8   -> 16 triplets
    shapes = [(2, 32, 4), (2, 64, 8)]

    anchors, variances, select_normals, select_abnormals = [], [], [], []
    for (B, C, k) in shapes:
        key, k1, k2, k3, k4 = jax.random.split(key, 5)
        anchors.append(jax.random.normal(k1, (C,), dtype=jnp.float32))
        variances.append(  # must be positive
            jax.random.uniform(k2, (C,), dtype=jnp.float32, minval=0.5, maxval=1.5))
        select_normals.append(jax.random.normal(k3, (B, C, k), dtype=jnp.float32))
        select_abnormals.append(jax.random.normal(k4, (B, C, k), dtype=jnp.float32))

    loss = mpp_loss(anchors, variances, select_normals, select_abnormals)
    loss = jax.block_until_ready(loss)

    ref = _reference_jnp(anchors, variances, select_normals, select_abnormals)
    assert jnp.allclose(loss, ref, rtol=1e-5, atol=1e-5), (loss, ref)

    print("KERNEL_OK")
</pallas_src>

<mosaic_0001>
module attributes {stable_mosaic.version = 11 : i64} {
  func.func @_mpp_fused_kernel(%arg0: memref<2xf32, #tpu.memory_space<smem>>, %arg1: memref<2x32xf32, #tpu.memory_space<vmem>>, %arg2: memref<16x32xf32, #tpu.memory_space<vmem>>, %arg3: memref<2x64xf32, #tpu.memory_space<vmem>>, %arg4: memref<32x64xf32, #tpu.memory_space<vmem>>, %arg5: memref<1x1xf32, #tpu.memory_space<vmem>>) attributes {dimension_semantics = [], scalar_prefetch = 0 : i64, scratch_operands = 0 : i64, tpu.core_type = #tpu.core_type<tc>} {
    %c0 = arith.constant 0 : index
    %c0_0 = arith.constant 0 : index
    %0 = vector.load %arg1[%c0, %c0_0] : memref<2x32xf32, #tpu.memory_space<vmem>>, vector<1x32xf32>
    %c1 = arith.constant 1 : index
    %c0_1 = arith.constant 0 : index
    %1 = vector.load %arg1[%c1, %c0_1] : memref<2x32xf32, #tpu.memory_space<vmem>>, vector<1x32xf32>
    %c0_2 = arith.constant 0 : index
    %c0_3 = arith.constant 0 : index
    %2 = vector.load %arg2[%c0_2, %c0_3] : memref<16x32xf32, #tpu.memory_space<vmem>>, vector<16x32xf32>
    %3 = vector.broadcast %0 : vector<1x32xf32> to vector<16x32xf32>
    %4 = arith.subf %2, %3 : vector<16x32xf32>
    %5 = arith.mulf %4, %4 : vector<16x32xf32>
    %6 = vector.broadcast %1 : vector<1x32xf32> to vector<16x32xf32>
    %7 = arith.mulf %5, %6 : vector<16x32xf32>
    %cst = arith.constant dense<0.000000e+00> : vector<16xf32>
    %8 = vector.multi_reduction <add>, %7, %cst [1] : vector<16x32xf32> to vector<16xf32>
    %9 = vector.shape_cast %8 : vector<16xf32> to vector<16x1xf32>
    %10 = math.sqrt %9 : vector<16x1xf32>
    %11 = vector.extract_strided_slice %10 {offsets = [0, 0], sizes = [8, 1], strides = [1, 1]} : vector<16x1xf32> to vector<8x1xf32>
    %12 = vector.extract_strided_slice %10 {offsets = [8, 0], sizes = [8, 1], strides = [1, 1]} : vector<16x1xf32> to vector<8x1xf32>
    %13 = arith.subf %11, %12 : vector<8x1xf32>
    %cst_4 = arith.constant 1.000000e+00 : f32
    %14 = vector.broadcast %cst_4 : f32 to vector<8x1xf32>
    %15 = arith.addf %13, %14 : vector<8x1xf32>
    %cst_5 = arith.constant 0.000000e+00 : f32
    %16 = vector.broadcast %cst_5 : f32 to vector<8x1xf32>
    %17 = arith.maximumf %15, %16 : vector<8x1xf32>
    %cst_6 = arith.constant dense<0.000000e+00> : vector<1xf32>
    %18 = vector.multi_reduction <add>, %17, %cst_6 [0] : vector<8x1xf32> to vector<1xf32>
    %19 = vector.shape_cast %18 : vector<1xf32> to vector<1x1xf32>
    %cst_7 = arith.constant 1.250000e-01 : f32
    %20 = vector.broadcast %cst_7 : f32 to vector<1x1xf32>
    %21 = arith.mulf %19, %20 : vector<1x1xf32>
    %c0_8 = arith.constant 0 : index
    %c0_9 = arith.constant 0 : index
    %22 = vector.load %arg3[%c0_8, %c0_9] : memref<2x64xf32, #tpu.memory_space<vmem>>, vector<1x64xf32>
    %c1_10 = arith.constant 1 : index
    %c0_11 = arith.constant 0 : index
    %23 = vector.load %arg3[%c1_10, %c0_11] : memref<2x64xf32, #tpu.memory_space<vmem>>, vector<1x64xf32>
    %c0_12 = arith.constant 0 : index
    %c0_13 = arith.constant 0 : index
    %24 = vector.load %arg4[%c0_12, %c0_13] : memref<32x64xf32, #tpu.memory_space<vmem>>, vector<32x64xf32>
    %25 = vector.broadcast %22 : vector<1x64xf32> to vector<32x64xf32>
    %26 = arith.subf %24, %25 : vector<32x64xf32>
    %27 = arith.mulf %26, %26 : vector<32x64xf32>
    %28 = vector.broadcast %23 : vector<1x64xf32> to vector<32x64xf32>
    %29 = arith.mulf %27, %28 : vector<32x64xf32>
    %cst_14 = arith.constant dense<0.000000e+00> : vector<32xf32>
    %30 = vector.multi_reduction <add>, %29, %cst_14 [1] : vector<32x64xf32> to vector<32xf32>
    %31 = vector.shape_cast %30 : vector<32xf32> to vector<32x1xf32>
    %32 = math.sqrt %31 : vector<32x1xf32>
    %33 = vector.extract_strided_slice %32 {offsets = [0, 0], sizes = [16, 1], strides = [1, 1]} : vector<32x1xf32> to vector<16x1xf32>
    %34 = vector.extract_strided_slice %32 {offsets = [16, 0], sizes = [16, 1], strides = [1, 1]} : vector<32x1xf32> to vector<16x1xf32>
    %35 = arith.subf %33, %34 : vector<16x1xf32>
    %cst_15 = arith.constant 1.000000e+00 : f32
    %36 = vector.broadcast %cst_15 : f32 to vector<16x1xf32>
    %37 = arith.addf %35, %36 : vector<16x1xf32>
    %cst_16 = arith.constant 0.000000e+00 : f32
    %38 = vector.broadcast %cst_16 : f32 to vector<16x1xf32>
    %39 = arith.maximumf %37, %38 : vector<16x1xf32>
    %cst_17 = arith.constant dense<0.000000e+00> : vector<1xf32>
    %40 = vector.multi_reduction <add>, %39, %cst_17 [0] : vector<16x1xf32> to vector<1xf32>
    %41 = vector.shape_cast %40 : vector<1xf32> to vector<1x1xf32>
    %cst_18 = arith.constant 6.250000e-02 : f32
    %42 = vector.broadcast %cst_18 : f32 to vector<1x1xf32>
    %43 = arith.mulf %41, %42 : vector<1x1xf32>
    %c0_19 = arith.constant 0 : index
    %44 = memref.load %arg0[%c0_19] : memref<2xf32, #tpu.memory_space<smem>>
    %45 = vector.broadcast %44 : f32 to vector<1x1xf32>
    %46 = arith.mulf %45, %21 : vector<1x1xf32>
    %c1_20 = arith.constant 1 : index
    %47 = memref.load %arg0[%c1_20] : memref<2xf32, #tpu.memory_space<smem>>
    %48 = vector.broadcast %47 : f32 to vector<1x1xf32>
    %49 = arith.mulf %48, %43 : vector<1x1xf32>
    %50 = arith.addf %46, %49 : vector<1x1xf32>
    %c0_21 = arith.constant 0 : index
    %c0_22 = arith.constant 0 : index
    %51 = vector.load %arg5[%c0_21, %c0_22] : memref<1x1xf32, #tpu.memory_space<vmem>>, vector<1x1xf32>
    tpu.vector_store %arg5[%c0_21, %c0_22], %50 {strides = array<i32>} : memref<1x1xf32, #tpu.memory_space<vmem>>, vector<1x1xf32>,
    return
  }
}

</mosaic_0001>

<bundles_post_ra>
// kernel: _mpp_loss_impl.1
= control target key start
LH: loop header
LB: loop body
LE: loop exit
PB: predicated region body
PF: predicated region fallthrough
CT: control target
= control target key end

     0   :  { %10 = vsyncpa [#allocation4], 0  ;;  %s315_s0 = inlined_call_operand.vmem [shape: f32[2], index: 0, kind: input, shape index: {}]   ;;  %s316_s1 = inlined_call_operand.vmem [shape: f32[2,32], index: 1, kind: input, shape index: {}]   ;;  %s317_s2 = inlined_call_operand.vmem [shape: f32[16,32], index: 2, kind: input, shape index: {}]   ;;  %s318_s3 = inlined_call_operand.vmem [shape: f32[2,64], index: 3, kind: input, shape index: {}]   ;;  %s319_s4 = inlined_call_operand.vmem [shape: f32[32,64], index: 4, kind: input, shape index: {}]   ;;  %s320_s5 = inlined_call_operand.hbm [shape: f32[1,1], index: 5, kind: output, shape index: {}]  }
   0x1   :  { %11 = vsyncpa [#allocation3], 0  ;;  %s18_s20 = sshll.u32 %s315_s0, 4  ;;  %s19_s20 = int_to_ptr.vmem [resolvable:$true] %s18_s20 }
   0x2   :  { %s207_s21 = scalar_lea.vmem %s19_s20, 16  ;;  %p212_p1 = scmp.lt.s32.totalorder %s19_s20, %s19_s20 }
   0x3   :  { %p208_p0 = scmp.ne.s32.totalorder %s19_s20, %s207_s21  ;;  %p213_p2 = scmp.lt.s32.totalorder %s207_s21, %s207_s21 }
   0x5   :  { %p214_p3 = por %p213_p2, %p212_p1 }
   0x7   :  { %p215_p4 = pnand %p214_p3, %p208_p0 }
   0x9   :  { %218 = shalt.err (!%p215_p4)
}
   0xa   :  { %s243_s22 = smov [#allocation2]  }
   0xb   :  { %21 = dma.vmem_to_smem %s19_s20, 16, %s243_s22, [#allocation4]  }
   0xc   :  { %239 = dma.done.wait [#allocation4], 16  }
   0xd   :  { %240 = vsyncadd [#allocation4], 4294967280 }
   0xe   :  { %33 = sfence }
   0xf   :  { %v190_v0 = vld [vmem:[%s318_s3] ss:$0 sm:$0xff]  ;;  %v87_v1 = vld [vmem:[%s319_s4 + $0x10] sm:$0xff]  ;;  %v88_v4 = vld [vmem:[%s319_s4 + $0x18] sm:$0xff]  ;;  %vm109_vm0 = vcmask 523264   ;;  %vm52_vm1 = vcmask 261120  }
  0x10   :  { %v95_v2 = vsub.f32 %v87_v1, %v190_v0  ;;  %v85_v3 = vld [vmem:[%s319_s4] sm:$0xff]  ;;  %v86_v5 = vld [vmem:[%s319_s4 + $0x8] sm:$0xff]  ;;  %v96_v8 = vsub.f32 %v88_v4, %v190_v0  ;;  %s244_s15 = smov [#allocation5]   ;;  %vm171_vm14 = vcmask 0  }
  0x11   :  { %v191_v6 = vld [vmem:[%s318_s3 + $0x1] ss:$0 sm:$0xff]  ;;  %v93_v7 = vsub.f32 %v85_v3, %v190_v0  ;;  %v94_v9 = vsub.f32 %v86_v5, %v190_v0  ;;  %v188_v10 = vld [vmem:[%s316_s1] ss:$0 sm:$0xff]  ;;  %v37_v11 = vld [vmem:[%s317_s2 + $0x8] sm:$0xff]  ;;  %s179_s16 = sshll.u32 %s244_s15, 4  ;;  %s180_s16 = int_to_ptr.vmem [resolvable:$true] %s179_s16 }
  0x12   :  { %v99_v12 = vmul.f32 %v95_v2, %v95_v2  ;;  %v43_v13 = vsub.f32 %v37_v11, %v188_v10  ;;  %v36_v14 = vld [vmem:[%s317_s2] sm:$0xff]  ;;  %v100_v16 = vmul.f32 %v96_v8, %v96_v8  ;;  %s164_s2 = sld [smem:[#allocation2]]  ;;  %s219_s17 = scalar_lea.vmem %s180_s16, 16 }
  0x13   :  { %v97_v15 = vmul.f32 %v93_v7, %v93_v7  ;;  %v98_v17 = vmul.f32 %v94_v9, %v94_v9  ;;  %v42_v18 = vsub.f32 %v36_v14, %v188_v10  ;;  %v189_v24 = vld [vmem:[%s316_s1 + $0x1] ss:$0 sm:$0xff]  ;;  %s192_s1 = sld [smem:[#allocation2 + $0x1]]  ;;  %p220_p5 = scmp.ne.s32.totalorder %s180_s16, %s219_s17 }
  0x14   :  { %v107_v19 = vmul.f32 %v191_v6, %v99_v12  ;;  %v45_v20 = vmul.f32 %v43_v13, %v43_v13  ;;  %v108_v22 = vmul.f32 %v191_v6, %v100_v16  ;;  %s223_s18 = scalar_lea.vmem %s180_s16, 32  ;;  %p224_p6 = scmp.lt.s32.totalorder %s180_s16, %s180_s16 }
  0x15   :  { %v105_v21 = vmul.f32 %v191_v6, %v97_v15  ;;  %v106_v23 = vmul.f32 %v191_v6, %v98_v17  ;;  %v44_v25 = vmul.f32 %v42_v18, %v42_v18  ;;  %p225_p7 = scmp.lt.s32.totalorder %s223_s18, %s219_s17 }
  0x16   :  { %v116_v26 = vsel %vm109_vm0, %v107_v19, 0.0  ;;  %v119_v28 = vsel %vm109_vm0, %v108_v22, 0.0  ;;  %v51_v29 = vmul.f32 %v189_v24, %v45_v20 }
  0x17   :  { %117 = vadd.xlane.f32.xlu1 %v116_v26  ;;  %v110_v27 = vsel %vm109_vm0, %v105_v21, 0.0  ;;  %v113_v30 = vsel %vm109_vm0, %v106_v23, 0.0  ;;  %v50_v31 = vmul.f32 %v189_v24, %v44_v25  ;;  %p226_p8 = por %p225_p7, %p224_p6 }
  0x18   :  { %111 = vadd.xlane.f32.xlu0 %v110_v27  ;;  %v56_v32 = vsel %vm52_vm1, %v51_v29, 0.0  ;;  %v165_v29 = vstv %s164_s2 }
  0x19   :  { %v53_v33 = vsel %vm52_vm1, %v50_v31, 0.0  ;;  %p227_p9 = pnand %p226_p8, %p220_p5 }
  0x1b   :  { %120 = vadd.xlane.f32.xlu1 %v119_v28 }
  0x1c   :  { %114 = vadd.xlane.f32.xlu0 %v113_v30  ;;  %v168_v30 = vstv %s192_s1 }
  0x1f   :  { %57 = vadd.xlane.f32.xlu1 %v56_v32 }
  0x20   :  { %54 = vadd.xlane.f32.xlu0 %v53_v33 }
  0xa0   :  { %v118_v34 = vpop.xlane.xlu1 %117 }
  0xa1   :  { %195 = vrsqrt.f32 %v118_v34  ;;  %v112_v35 = vpop.xlane.xlu0 %111  ;;  %vm138_vm2 = vcmp.eq.f32.partialorder %v118_v34, inf  ;;  %v141_v43 = vand.u32 2147483648, %v118_v34  ;;  %vm140_vm3 = vcmp.eq.f32.partialorder %v118_v34, 0.0 }
  0xa2   :  { %197 = vrsqrt.f32 %v112_v35  ;;  %vm124_vm4 = vcmp.eq.f32.partialorder %v112_v35, inf  ;;  %v127_v46 = vand.u32 2147483648, %v112_v35  ;;  %vm126_vm5 = vcmp.eq.f32.partialorder %v112_v35, 0.0 }
  0xa4   :  { %v121_v36 = vpop.xlane.xlu1 %120 }
  0xa5   :  { %199 = vrsqrt.f32 %v121_v36  ;;  %v115_v37 = vpop.xlane.xlu0 %114  ;;  %vm145_vm6 = vcmp.eq.f32.partialorder %v121_v36, inf  ;;  %v148_v54 = vand.u32 2147483648, %v121_v36  ;;  %vm147_vm7 = vcmp.eq.f32.partialorder %v121_v36, 0.0 }
  0xa6   :  { %201 = vrsqrt.f32 %v115_v37  ;;  %vm131_vm8 = vcmp.eq.f32.partialorder %v115_v37, inf  ;;  %v134_v57 = vand.u32 2147483648, %v115_v37  ;;  %vm133_vm9 = vcmp.eq.f32.partialorder %v115_v37, 0.0 }
  0xa8   :  { %v58_v38 = vpop.xlane.xlu1 %57 }
  0xa9   :  { %203 = vrsqrt.f32 %v58_v38  ;;  %v55_v39 = vpop.xlane.xlu0 %54  ;;  %vm68_vm10 = vcmp.eq.f32.partialorder %v58_v38, inf  ;;  %v71_v1 = vand.u32 2147483648, %v58_v38  ;;  %vm70_vm11 = vcmp.eq.f32.partialorder %v58_v38, 0.0 }
  0xaa   :  { %205 = vrsqrt.f32 %v55_v39  ;;  %vm61_vm12 = vcmp.eq.f32.partialorder %v55_v39, inf  ;;  %v64_v5 = vand.u32 2147483648, %v55_v39  ;;  %vm63_vm13 = vcmp.eq.f32.partialorder %v55_v39, 0.0 }
  0xae   :  { %v196_v40 = vpop.eup %195 }
  0xaf   :  { %v198_v41 = vpop.eup %197  ;;  %v137_v42 = vmul.f32 %v196_v40, %v118_v34 }
  0xb0   :  { %v123_v44 = vmul.f32 %v198_v41, %v112_v35 }
  0xb1   :  { %v139_v45 = vsel %vm138_vm2, %v118_v34, %v137_v42 }
  0xb2   :  { %v200_v47 = vpop.eup %199  ;;  %v142_v48 = vsel %vm140_vm3, %v141_v43, %v139_v45  ;;  %v125_v49 = vsel %vm124_vm4, %v112_v35, %v123_v44 }
  0xb3   :  { %v202_v50 = vpop.eup %201  ;;  %v128_v51 = vsel %vm126_vm5, %v127_v46, %v125_v49  ;;  %v144_v52 = vmul.f32 %v200_v47, %v121_v36 }
  0xb4   :  { %v150_v53 = vsub.f32 %v128_v51, %v142_v48  ;;  %v130_v55 = vmul.f32 %v202_v50, %v115_v37 }
  0xb5   :  { %v146_v56 = vsel %vm145_vm6, %v121_v36, %v144_v52 }
  0xb6   :  { %v204_v58 = vpop.eup %203  ;;  %v149_v59 = vsel %vm147_vm7, %v148_v54, %v146_v56  ;;  %v132_v60 = vsel %vm131_vm8, %v115_v37, %v130_v55  ;;  %v152_v3 = vadd.f32 1.0, %v150_v53 }
  0xb7   :  { %v206_v61 = vpop.eup %205  ;;  %v135_v62 = vsel %vm133_vm9, %v134_v57, %v132_v60  ;;  %v67_v63 = vmul.f32 %v204_v58, %v58_v38 }
  0xb8   :  { %v151_v0 = vsub.f32 %v135_v62, %v149_v59  ;;  %v60_v2 = vmul.f32 %v206_v61, %v55_v39  ;;  %v154_v11 = vmax.f32 %v152_v3, 0.0 }
  0xb9   :  { %v69_v4 = vsel %vm68_vm10, %v58_v38, %v67_v63 }
  0xba   :  { %v72_v6 = vsel %vm70_vm11, %v71_v1, %v69_v4  ;;  %v62_v7 = vsel %vm61_vm12, %v55_v39, %v60_v2  ;;  %v153_v8 = vadd.f32 1.0, %v151_v0 }
  0xbb   :  { %v65_v9 = vsel %vm63_vm13, %v64_v5, %v62_v7 }
  0xbc   :  { %v73_v10 = vsub.f32 %v65_v9, %v72_v6  ;;  %v155_v12 = vmax.f32 %v153_v8, 0.0 }
  0xbe   :  { %v74_v13 = vadd.f32 1.0, %v73_v10  ;;  %v156_v14 = vadd.f32 %v155_v12, %v154_v11 }
  0xc0   :  { %v75_v15 = vmax.f32 %v74_v13, 0.0  ;;  %v157_v16 = vrot.slane %v156_v14, 4 }
  0xc2   :  { %v76_v17 = vrot.slane %v75_v15, 4  ;;  %v158_v18 = vadd.f32 %v157_v16, %v156_v14 }
  0xc4   :  { %v77_v19 = vadd.f32 %v76_v17, %v75_v15  ;;  %v159_v20 = vrot.slane %v158_v18, 2 }
  0xc6   :  { %v78_v21 = vrot.slane %v77_v19, 2  ;;  %v160_v22 = vadd.f32 %v159_v20, %v158_v18 }
  0xc8   :  { %v79_v23 = vadd.f32 %v78_v21, %v77_v19  ;;  %v161_v24 = vrot.slane %v160_v22, 1 }
  0xca   :  { %v80_v25 = vrot.slane %v79_v23, 1  ;;  %v162_v26 = vadd.f32 %v161_v24, %v160_v22 }
  0xcc   :  { %v81_v27 = vadd.f32 %v80_v25, %v79_v23  ;;  %v163_v28 = vmul.f32 0.0625, %v162_v26 }
  0xce   :  { %v82_v31 = vmul.f32 0.125, %v81_v27  ;;  %v169_v33 = vmul.f32 %v168_v30, %v163_v28 }
  0xd0   :  { %v166_v32 = vmul.f32 %v165_v29, %v82_v31 }
  0xd2   :  { %v170_v34 = vadd.f32 %v169_v33, %v166_v32 }
  0xd4   :  { %172 = vst.msk [vmem:[#allocation5] sm:$0x1] %vm171_vm14, %v170_v34 }
  0xd5   :  { %230 = shalt.err (!%p227_p9)
}
  0xd6   :  { %182 = dma.vmem_to_hbm [thread:$0]  %s180_s16, 16, %s320_s5, [#allocation3]  }
  0xd7   :  { %241 = dma.done.wait [#allocation3], 16  }
  0xd8   :  { %242 = vsyncadd [#allocation3], 4294967280 }
  0xd9   :  { %186 = vsyncpa [#allocation3], 1 }
  0xda   :  { %187 = vsyncpa [#allocation4], 1 }

</bundles_post_ra>
